<compile_context>
chip_gen: v5e
topology: v5e:2x2
jax: 0.10.0
libtpu: 0.0.40
codegen_flags: <defaults>
</compile_context>

<pallas_src>
import jax
import jax.numpy as jnp
from jax.experimental import pallas as pl
from jax.experimental.pallas import tpu as pltpu

# ---- model config (mirrors the fields read from `args` in __init__) -------------
V = 100          # args.embed_num   (vocab size)
D = 32           # args.embed_dim
C = 4            # args.class_num
Co = 8           # args.kernel_num
KS = (3, 4, 5)   # args.kernel_sizes
N = 2            # batch
L = 16           # sequence length

KMAX = max(KS)
CF = len(KS) * Co            # real fused conv output channels (24)

# ---- tile-aligned padded sizes ---------------------------------------------------
V_PAD = 128                  # vocab padded to a full lane tile
CF_PAD = 128                 # fused conv channels padded to a full lane tile
C_PAD = 128                  # logits padded to a full lane tile
N_PAD = 8                    # batch padded to a full sublane tile
NL_PAD = N_PAD * L           # flattened padded (batch, time) rows (128)
NL_EXT_PAD = NL_PAD + 8      # + dummy rows so shifted slices stay in-bounds (136)
NEG = -1.0e30                # "minus infinity" for masked time positions


def _cnn_attention_kernel(tok_ref, emb_ref, wf_ref, bm_ref, fcw_ref, fcb_ref, o_ref):
    """Single un-gridded invocation over the whole (padded) batch.

    tok_ref : (NL_EXT_PAD, 1) int32   flattened token ids + dummy rows
    emb_ref : (V_PAD, D)       f32    zero-padded embedding table
    wf_ref  : (KMAX*D, CF_PAD) f32    fused, im2col-flattened conv weights
    bm_ref  : (NL_PAD, CF_PAD) f32    conv bias + validity mask (NEG at invalid t)
    fcw_ref : (CF_PAD, C_PAD)  f32    zero-padded FC weight
    fcb_ref : (1, C_PAD)       f32    zero-padded FC bias
    o_ref   : (N_PAD, C_PAD)   f32    padded logits (first N rows / C lanes real)
    """
    # ---- embedding gather fused in-kernel as a one-hot matmul (exact in f32).
    # TODO(synk): at realistic vocab / N*L sizes replace with a DMA row-gather
    #             (scalar-prefetch page of ids + manual async copies).
    tok = tok_ref[...]                                                    # (NL_EXT_PAD, 1)
    vocab_iota = jax.lax.broadcasted_iota(jnp.int32, (NL_EXT_PAD, V_PAD), 1)
    onehot = (vocab_iota == tok).astype(jnp.float32)                      # (NL_EXT_PAD, V_PAD)
    x = jnp.dot(onehot, emb_ref[...],
                preferred_element_type=jnp.float32)                       # (NL_EXT_PAD, D)

    # ---- im2col: all filter widths, all channels, whole batch in ONE MXU push.
    # x_cat[r, k*D + d] = x[r + k, d]; wf_ref is pre-flattened to match.
    x_cat = jnp.concatenate([x[k:k + NL_PAD, :] for k in range(KMAX)], axis=1)
    conv = jnp.dot(x_cat, wf_ref[...],
                   preferred_element_type=jnp.float32)                    # (NL_PAD, CF_PAD)

    # ---- bias + validity mask fused in one add, then ReLU. Invalid time
    # positions (t >= L-K+1 per filter group, incl. cross-batch / dummy reads)
    # carry NEG and are clamped to exactly 0; valid ReLU outputs are >= 0, so
    # the subsequent max over time is exact.
    act = jnp.maximum(conv + bm_ref[...], 0.0)

    # ---- per-(padded)-batch max-pool over time: one reshaped sublane reduction.
    feat = jnp.max(act.reshape(N_PAD, L, CF_PAD), axis=1)                 # (N_PAD, CF_PAD)

    # ---- FC into a lane-dense padded slab; single unmasked full-vreg store.
    o_ref[...] = (jnp.dot(feat, fcw_ref[...],
                          preferred_element_type=jnp.float32) + fcb_ref[...])


def cnn_attention_forward(token_ids, embed_w, conv_ws, conv_bs, fc_w, fc_b):
    # ---- one-time parameter packing (happens at init time in a real model) ------
    emb_pad = jnp.zeros((V_PAD, D), jnp.float32).at[:V].set(
        embed_w.astype(jnp.float32))

    # Fused conv weights, zero-padded along K and channels, im2col-flattened.
    wf = jnp.zeros((KMAX, D, CF_PAD), jnp.float32)
    for i, (K, w) in enumerate(zip(KS, conv_ws)):
        wf = wf.at[:K, :, i * Co:(i + 1) * Co].set(w)
    wf_cat = wf.reshape(KMAX * D, CF_PAD)          # row k*D+d matches x_cat lane k*D+d

    # Conv bias + time-validity mask folded into one additive (NL_PAD, CF_PAD) term.
    bf = jnp.concatenate(conv_bs, axis=1)                                  # (1, CF)
    bf_pad = jnp.zeros((1, CF_PAD), jnp.float32).at[:, :CF].set(bf)
    t_local = jnp.arange(NL_PAD, dtype=jnp.int32) % L
    k_of_c = jnp.zeros((CF_PAD,), jnp.int32)
    for i, K in enumerate(KS):
        k_of_c = k_of_c.at[i * Co:(i + 1) * Co].set(K)
    valid = t_local[:, None] < (L - k_of_c[None, :] + 1)                   # (NL_PAD, CF_PAD)
    biasmask = jnp.where(valid, bf_pad, jnp.float32(NEG))

    fcw_pad = jnp.zeros((CF_PAD, C_PAD), jnp.float32).at[:CF, :C].set(fc_w)
    fcb_pad = jnp.zeros((1, C_PAD), jnp.float32).at[:, :C].set(fc_b)

    tok_ext = jnp.zeros((NL_EXT_PAD,), jnp.int32).at[:N * L].set(
        token_ids.reshape(-1).astype(jnp.int32)).reshape(NL_EXT_PAD, 1)

    # Advisory cost for XLA's scheduler around this tiny custom call.
    flops = 2 * (NL_EXT_PAD * V_PAD * D
                 + NL_PAD * (KMAX * D) * CF_PAD
                 + N_PAD * CF_PAD * C_PAD)
    bytes_accessed = 4 * (NL_EXT_PAD * 1 + V_PAD * D + KMAX * D * CF_PAD
                          + NL_PAD * CF_PAD + CF_PAD * C_PAD + C_PAD
                          + N_PAD * C_PAD)

    vmem = pl.BlockSpec(memory_space=pltpu.MemorySpace.VMEM)
    out = pl.pallas_call(
        _cnn_attention_kernel,
        out_shape=jax.ShapeDtypeStruct((N_PAD, C_PAD), jnp.float32),
        in_specs=[vmem] * 6,
        out_specs=vmem,
        cost_estimate=pl.CostEstimate(flops=flops, transcendentals=0,
                                      bytes_accessed=bytes_accessed),
    )(tok_ext, emb_pad, wf_cat, biasmask, fcw_pad, fcb_pad)
    return out[:N, :C]


def reference_forward(token_ids, embed_w, conv_ws, conv_bs, fc_w, fc_b):
    # Pure-JAX reference replicating the PyTorch forward semantics.
    x = embed_w[token_ids].astype(jnp.float32)  # (N, L, D)
    feats = []
    for K, w, b in zip(KS, conv_ws, conv_bs):
        lout = L - K + 1
        acc = jnp.zeros((x.shape[0], lout, Co), jnp.float32)
        for k in range(K):
            acc = acc + jnp.einsum("nld,dc->nlc", x[:, k:k + lout, :], w[k])
        acc = jax.nn.relu(acc + b[None])       # (N, lout, Co)
        feats.append(jnp.max(acc, axis=1))     # (N, Co)
    feat = jnp.concatenate(feats, axis=1)       # (N, len(KS)*Co)
    return feat @ fc_w + fc_b


def init_params(key):
    keys = jax.random.split(key, 3 + 2 * len(KS))
    embed_w = 0.1 * jax.random.normal(keys[0], (V, D), jnp.float32)
    conv_ws, conv_bs = [], []
    for i, K in enumerate(KS):
        conv_ws.append(0.1 * jax.random.normal(keys[1 + 2 * i], (K, D, Co), jnp.float32))
        conv_bs.append(0.1 * jax.random.normal(keys[2 + 2 * i], (1, Co), jnp.float32))
    fc_w = 0.1 * jax.random.normal(keys[-2], (len(KS) * Co, C), jnp.float32)
    fc_b = 0.1 * jax.random.normal(keys[-1], (1, C), jnp.float32)
    return embed_w, tuple(conv_ws), tuple(conv_bs), fc_w, fc_b


if __name__ == "__main__":
    key = jax.random.PRNGKey(0)
    k_tok, k_param = jax.random.split(key)
    token_ids = jax.random.randint(k_tok, (N, L), 0, V, dtype=jnp.int32)
    embed_w, conv_ws, conv_bs, fc_w, fc_b = init_params(k_param)

    logits = cnn_attention_forward(token_ids, embed_w, conv_ws, conv_bs, fc_w, fc_b)
    logits = jax.block_until_ready(logits)

    ref = reference_forward(token_ids, embed_w, conv_ws, conv_bs, fc_w, fc_b)
    assert logits.shape == (N, C)
    assert jnp.allclose(logits, ref, atol=1e-4, rtol=1e-4), "mismatch vs reference"

    print("KERNEL_OK")
</pallas_src>

<mosaic_0001>
module attributes {stable_mosaic.version = 11 : i64} {
  func.func @_cnn_attention_kernel(%arg0: memref<136x1xi32, #tpu.memory_space<vmem>>, %arg1: memref<128x32xf32, #tpu.memory_space<vmem>>, %arg2: memref<160x128xf32, #tpu.memory_space<vmem>>, %arg3: memref<128x128xf32, #tpu.memory_space<vmem>>, %arg4: memref<128x128xf32, #tpu.memory_space<vmem>>, %arg5: memref<1x128xf32, #tpu.memory_space<vmem>>, %arg6: memref<8x128xf32, #tpu.memory_space<vmem>>) attributes {dimension_semantics = [], scalar_prefetch = 0 : i64, scratch_operands = 0 : i64, tpu.core_type = #tpu.core_type<tc>} {
    %c0 = arith.constant 0 : index
    %c0_0 = arith.constant 0 : index
    %0 = vector.load %arg0[%c0, %c0_0] : memref<136x1xi32, #tpu.memory_space<vmem>>, vector<136x1xi32>
    %1 = tpu.iota {dimensions = array<i32: 1>} : vector<136x128xi32>
    %2 = vector.broadcast %0 : vector<136x1xi32> to vector<136x128xi32>
    %3 = arith.cmpi eq, %1, %2 : vector<136x128xi32>
    %4 = arith.extui %3 : vector<136x128xi1> to vector<136x128xi32>
    %5 = arith.sitofp %4 : vector<136x128xi32> to vector<136x128xf32>
    %c0_1 = arith.constant 0 : index
    %c0_2 = arith.constant 0 : index
    %6 = vector.load %arg1[%c0_1, %c0_2] : memref<128x32xf32, #tpu.memory_space<vmem>>, vector<128x32xf32>
    %cst = arith.constant dense<0.000000e+00> : vector<136x32xf32>
    %7 = tpu.matmul %5, %6, %cst {dimension_numbers = #tpu.dot_dimension_numbers<[1], [0], [0], [1], [0, 0, 1, 1], [], []>} : vector<136x128xf32>, vector<128x32xf32>, vector<136x32xf32> -> vector<136x32xf32>
    %8 = vector.extract_strided_slice %7 {offsets = [0, 0], sizes = [128, 32], strides = [1, 1]} : vector<136x32xf32> to vector<128x32xf32>
    %9 = vector.extract_strided_slice %7 {offsets = [1, 0], sizes = [128, 32], strides = [1, 1]} : vector<136x32xf32> to vector<128x32xf32>
    %10 = vector.extract_strided_slice %7 {offsets = [2, 0], sizes = [128, 32], strides = [1, 1]} : vector<136x32xf32> to vector<128x32xf32>
    %11 = vector.extract_strided_slice %7 {offsets = [3, 0], sizes = [128, 32], strides = [1, 1]} : vector<136x32xf32> to vector<128x32xf32>
    %12 = vector.extract_strided_slice %7 {offsets = [4, 0], sizes = [128, 32], strides = [1, 1]} : vector<136x32xf32> to vector<128x32xf32>
    %13 = tpu.concatenate %8, %9, %10, %11, %12 in 1 : vector<128x32xf32>, vector<128x32xf32>, vector<128x32xf32>, vector<128x32xf32>, vector<128x32xf32> -> vector<128x160xf32>
    %c0_3 = arith.constant 0 : index
    %c0_4 = arith.constant 0 : index
    %14 = vector.load %arg2[%c0_3, %c0_4] : memref<160x128xf32, #tpu.memory_space<vmem>>, vector<160x128xf32>
    %cst_5 = arith.constant dense<0.000000e+00> : vector<128x128xf32>
    %15 = tpu.matmul %13, %14, %cst_5 {dimension_numbers = #tpu.dot_dimension_numbers<[1], [0], [0], [1], [0, 0, 1, 1], [], []>} : vector<128x160xf32>, vector<160x128xf32>, vector<128x128xf32> -> vector<128x128xf32>
    %c0_6 = arith.constant 0 : index
    %c0_7 = arith.constant 0 : index
    %16 = vector.load %arg3[%c0_6, %c0_7] : memref<128x128xf32, #tpu.memory_space<vmem>>, vector<128x128xf32>
    %17 = arith.addf %15, %16 : vector<128x128xf32>
    %cst_8 = arith.constant 0.000000e+00 : f32
    %18 = vector.broadcast %cst_8 : f32 to vector<128x128xf32>
    %19 = arith.maximumf %17, %18 : vector<128x128xf32>
    %20 = vector.shape_cast %19 : vector<128x128xf32> to vector<8x16x128xf32>
    %cst_9 = arith.constant dense<0xFF800000> : vector<8x128xf32>
    %21 = vector.multi_reduction <maximumf>, %20, %cst_9 [1] : vector<8x16x128xf32> to vector<8x128xf32>
    %c0_10 = arith.constant 0 : index
    %c0_11 = arith.constant 0 : index
    %22 = vector.load %arg4[%c0_10, %c0_11] : memref<128x128xf32, #tpu.memory_space<vmem>>, vector<128x128xf32>
    %cst_12 = arith.constant dense<0.000000e+00> : vector<8x128xf32>
    %23 = tpu.matmul %21, %22, %cst_12 {dimension_numbers = #tpu.dot_dimension_numbers<[1], [0], [0], [1], [0, 0, 1, 1], [], []>} : vector<8x128xf32>, vector<128x128xf32>, vector<8x128xf32> -> vector<8x128xf32>
    %c0_13 = arith.constant 0 : index
    %c0_14 = arith.constant 0 : index
    %24 = vector.load %arg5[%c0_13, %c0_14] : memref<1x128xf32, #tpu.memory_space<vmem>>, vector<1x128xf32>
    %25 = vector.broadcast %24 : vector<1x128xf32> to vector<8x128xf32>
    %26 = arith.addf %23, %25 : vector<8x128xf32>
    %c0_15 = arith.constant 0 : index
    %c0_16 = arith.constant 0 : index
    %27 = vector.load %arg6[%c0_15, %c0_16] : memref<8x128xf32, #tpu.memory_space<vmem>>, vector<8x128xf32>
    tpu.vector_store %arg6[%c0_15, %c0_16], %26 {strides = array<i32>} : memref<8x128xf32, #tpu.memory_space<vmem>>, vector<8x128xf32>,
    return
  }
}

</mosaic_0001>

<bundles_post_ra>
// kernel: tpu_custom_call.1
= control target key start
LH: loop header
LB: loop body
LE: loop exit
PB: predicated region body
PF: predicated region fallthrough
CT: control target
= control target key end

     0   :  { %11 = vsyncpa [#allocation3], 0  ;;  %s1774_s0 = inlined_call_operand.vmem [shape: s32[136,1], index: 0, kind: input, shape index: {}]   ;;  %s1775_s1 = inlined_call_operand.vmem [shape: f32[128,32], index: 1, kind: input, shape index: {}]   ;;  %s1776_s2 = inlined_call_operand.vmem [shape: f32[160,128], index: 2, kind: input, shape index: {}]   ;;  %s1777_s3 = inlined_call_operand.vmem [shape: f32[128,128], index: 3, kind: input, shape index: {}]   ;;  %s1778_s4 = inlined_call_operand.hbm [shape: f32[128,128], index: 4, kind: input, shape index: {}]   ;;  %s1779_s5 = inlined_call_operand.vmem [shape: f32[1,128], index: 5, kind: input, shape index: {}]   ;;  %s1780_s6 = inlined_call_operand.hbm [shape: f32[8,128], index: 6, kind: output, shape index: {}]  }
   0x1   :  { %12 = vsyncpa [#allocation4], 0  ;;  %s25_s23 = sshll.u32 %s1778_s4, 4  ;;  %s1206_s24 = smov [#allocation2]   ;;  %s26_s23 = int_to_ptr.hbm [resolvable:$true] %s25_s23 }
   0x2   :  { %s27_s25 = sshll.u32 %s1206_s24, 4  ;;  %s1207_s26 = smov 128   ;;  %s28_s25 = int_to_ptr.vmem [resolvable:$true] %s27_s25 }
   0x3   :  { %s1208_s27 = smov 8  }
   0x4   :  { %33 = dma.hbm_to_vmem [thread:$0]  %s26_s23, 2048, %s28_s25, [#allocation3], %s1207_s26, %s1207_s26, %s1208_s27  }
   0x5   :  { %1202 = dma.done.wait [#allocation3], 2048  }
   0x6   :  { %1203 = vsyncadd [#allocation3], 4294965248  ;;  %v1209_v0 = vmov 0   ;;  %v42_v1 = vld [vmem:[%s1774_s0 + $0x10] sm:$0xff]  ;;  %v40_v2 = vld [vmem:[%s1774_s0] sm:$0xff]  ;;  %v57_v34 = vlaneseq  ;;  %v1210_v39 = vmov 1.0  }
   0x7   :  { %1036 = vset.pattern.permute.xlu1 %v1209_v0  ;;  %1035 = vset.pattern.permute.xlu0 %v1209_v0  ;;  %v44_v3 = vld [vmem:[%s1774_s0 + $0x20] sm:$0xff]  ;;  %v43_v4 = vld [vmem:[%s1774_s0 + $0x18] sm:$0xff]  ;;  %v41_v5 = vld [vmem:[%s1774_s0 + $0x8] sm:$0xff]  ;;  %s1211_s25 = smov 96   ;;  %s1212_s26 = smov 64  }
   0x8   :  { %1037 = vset.pattern.permute.xlu2 %v1209_v0  ;;  %66 = vperm.xlu1 %1036, %v42_v1   ;;  %v45_v6 = vld [vmem:[%s1774_s0 + $0x28] sm:$0xff]  ;;  %v176_v7 = vld [vmem:[%s1775_s1 + $0x78] sm:$0xff]  ;;  %v175_v8 = vld [vmem:[%s1775_s1 + $0x70] sm:$0xff]  ;;  %v58_v35 = vand.u32 127, %v57_v34  ;;  %s1213_s27 = smov 32   ;;  %s1214_s12 = smov [#allocation5]  }
   0x9   :  { %60 = vperm.xlu0 %1035, %v40_v2   ;;  %72 = vperm.xlu2 %1037, %v44_v3   ;;  %v174_v9 = vld [vmem:[%s1775_s1 + $0x68] sm:$0xff]  ;;  %v173_v10 = vld [vmem:[%s1775_s1 + $0x60] sm:$0xff]  ;;  %v46_v12 = vld [vmem:[%s1774_s0 + $0x30] sm:$0xff]  ;;  %s932_s13 = sshll.u32 %s1214_s12, 4  ;;  %s934_s16 = sshll.u32 %s1780_s6, 4  ;;  %s933_s13 = int_to_ptr.vmem [resolvable:$true] %s932_s13  ;;  %s935_s16 = int_to_ptr.hbm [resolvable:$true] %s934_s16 }
   0xa   :  { %177 = vmatpush.msra.mxu0 %v176_v7  ;;  %994 = vmatpush.msra.mxu3 %v176_v7  ;;  %v52_v11 = vld [vmem:[%s1774_s0 + $0x60] sm:$0xff]  ;;  %v172_v13 = vld [vmem:[%s1775_s1 + $0x58] sm:$0xff]  ;;  %v171_v15 = vld [vmem:[%s1775_s1 + $0x50] sm:$0xff] }
   0xb   :  { %v47_v14 = vld [vmem:[%s1774_s0 + $0x38] sm:$0xff]  ;;  %v170_v16 = vld [vmem:[%s1775_s1 + $0x48] sm:$0xff]  ;;  %v169_v17 = vld [vmem:[%s1775_s1 + $0x40] sm:$0xff] }
   0xc   :  { %178 = vmatpush.msra.mxu0 %v175_v8  ;;  %995 = vmatpush.msra.mxu3 %v175_v8  ;;  %v48_v18 = vld [vmem:[%s1774_s0 + $0x40] sm:$0xff]  ;;  %v53_v19 = vld [vmem:[%s1774_s0 + $0x68] sm:$0xff]  ;;  %v168_v20 = vld [vmem:[%s1775_s1 + $0x38] sm:$0xff] }
   0xd   :  { %v54_v21 = vld [vmem:[%s1774_s0 + $0x70] sm:$0xff]  ;;  %v166_v23 = vld [vmem:[%s1775_s1 + $0x28] sm:$0xff]  ;;  %v165_v24 = vld [vmem:[%s1775_s1 + $0x20] sm:$0xff] }
   0xe   :  { %179 = vmatpush.msra.mxu0 %v174_v9  ;;  %996 = vmatpush.msra.mxu3 %v174_v9  ;;  %v167_v22 = vld [vmem:[%s1775_s1 + $0x30] sm:$0xff]  ;;  %v55_v25 = vld [vmem:[%s1774_s0 + $0x78] sm:$0xff]  ;;  %v49_v26 = vld [vmem:[%s1774_s0 + $0x48] sm:$0xff] }
   0xf   :  { %v164_v27 = vld [vmem:[%s1775_s1 + $0x18] sm:$0xff]  ;;  %v50_v28 = vld [vmem:[%s1774_s0 + $0x50] sm:$0xff]  ;;  %v162_v30 = vld [vmem:[%s1775_s1 + $0x8] sm:$0xff] }
  0x10   :  { %69 = vperm.xlu1 %1036, %v43_v4   ;;  %180 = vmatpush.msra.mxu0 %v173_v10  ;;  %v163_v29 = vld [vmem:[%s1775_s1 + $0x10] sm:$0xff]  ;;  %v51_v31 = vld [vmem:[%s1774_s0 + $0x58] sm:$0xff]  ;;  %v56_v32 = vld [vmem:[%s1774_s0 + $0x80] sm:$0xff] }
  0x11   :  { %63 = vperm.xlu0 %1035, %v41_v5   ;;  %75 = vperm.xlu2 %1037, %v45_v6   ;;  %v161_v33 = vld [vmem:[%s1775_s1] sm:$0xff]  ;;  %v612_v54 = vld [vmem:[%s1776_s2 + $0x98] sm:$0xff]  ;;  %v611_v55 = vld [vmem:[%s1776_s2 + $0x90] sm:$0xff] }
  0x12   :  { %997 = vmatpush.msra.mxu3 %v173_v10  ;;  %181 = vmatpush.msra.mxu0 %v172_v13  ;;  %v610_v56 = vld [vmem:[%s1776_s2 + $0x88] sm:$0xff]  ;;  %v609_v57 = vld [vmem:[%s1776_s2 + $0x80] sm:$0xff] }
  0x13   :  { %738 = vmatpush.msra.mxu2 %v612_v54 }
  0x14   :  { %998 = vmatpush.msra.mxu3 %v172_v13  ;;  %182 = vmatpush.msra.mxu0 %v171_v15 }
  0x15   :  { %739 = vmatpush.msra.mxu2 %v611_v55 }
  0x16   :  { %999 = vmatpush.msra.mxu3 %v171_v15  ;;  %183 = vmatpush.msra.mxu0 %v170_v16 }
  0x17   :  { %740 = vmatpush.msra.mxu2 %v610_v56 }
  0x18   :  { %96 = vperm.xlu1 %1036, %v52_v11   ;;  %1000 = vmatpush.msra.mxu3 %v170_v16 }
  0x19   :  { %78 = vperm.xlu0 %1035, %v46_v12   ;;  %81 = vperm.xlu2 %1037, %v47_v14  }
  0x1a   :  { %184 = vmatpush.msra.mxu0 %v169_v17  ;;  %1001 = vmatpush.msra.mxu3 %v169_v17 }
  0x1b   :  { %741 = vmatpush.msra.mxu2 %v609_v57 }
  0x1c   :  { %185 = vmatpush.msra.mxu0 %v168_v20  ;;  %1002 = vmatpush.msra.mxu3 %v168_v20 }
  0x1e   :  { %186 = vmatpush.msra.mxu0 %v167_v22  ;;  %1003 = vmatpush.msra.mxu3 %v167_v22 }
  0x20   :  { %84 = vperm.xlu1 %1036, %v48_v18   ;;  %187 = vmatpush.msra.mxu0 %v166_v23 }
  0x21   :  { %99 = vperm.xlu0 %1035, %v53_v19   ;;  %102 = vperm.xlu2 %1037, %v54_v21  }
  0x22   :  { %1004 = vmatpush.msra.mxu3 %v166_v23  ;;  %188 = vmatpush.msra.mxu0 %v165_v24 }
  0x24   :  { %1005 = vmatpush.msra.mxu3 %v165_v24  ;;  %189 = vmatpush.msra.mxu0 %v164_v27 }
  0x26   :  { %1006 = vmatpush.msra.mxu3 %v164_v27  ;;  %190 = vmatpush.msra.mxu0 %v163_v29 }
  0x28   :  { %105 = vperm.xlu1 %1036, %v55_v25   ;;  %1007 = vmatpush.msra.mxu3 %v163_v29 }
  0x29   :  { %87 = vperm.xlu0 %1035, %v49_v26   ;;  %90 = vperm.xlu2 %1037, %v50_v28  }
  0x2a   :  { %191 = vmatpush.msra.mxu0 %v162_v30  ;;  %1008 = vmatpush.msra.mxu3 %v162_v30 }
  0x2c   :  { %192 = vmatpush.msra.mxu0 %v161_v33  ;;  %1009 = vmatpush.msra.mxu3 %v161_v33 }
  0x30   :  { %93 = vperm.xlu1 %1036, %v51_v31  }
  0x31   :  { %108 = vperm.xlu0 %1035, %v56_v32  }
  0x63   :  { %v73_v36 = vpop.permute.xlu2 %72 }
  0x64   :  { %vm114_vm6 = vcmp.eq.s32.totalorder %v58_v35, %v73_v36 }
  0x6b   :  { %v76_v42 = vpop.permute.xlu2 %75 }
  0x6c   :  { %vm115_vm8 = vcmp.eq.s32.totalorder %v58_v35, %v76_v42 }
  0x73   :  { %v82_v45 = vpop.permute.xlu2 %81 }
  0x74   :  { %vm117_vm12 = vcmp.eq.s32.totalorder %v58_v35, %v82_v45 }
  0x7a   :  { %v67_v37 = vpop.permute.xlu1 %66 }
  0x7b   :  { %v61_v38 = vpop.permute.xlu0 %60  ;;  %vm112_vm2 = vcmp.eq.s32.totalorder %v58_v35, %v67_v37  ;;  %v103_v48 = vpop.permute.xlu2 %102 }
  0x7c   :  { %vm110_vm0 = vcmp.eq.s32.totalorder %v58_v35, %v61_v38  ;;  %vm124_vm7 = vcmp.eq.s32.totalorder %v58_v35, %v103_v48 }
  0x7d   :  { %961 = vmatmul.msk.f32.vlgmr.msra.gmra.mxu0 %vm110_vm0, %v1210_v39 }
  0x82   :  { %v70_v40 = vpop.permute.xlu1 %69 }
  0x83   :  { %v64_v41 = vpop.permute.xlu0 %63  ;;  %vm113_vm4 = vcmp.eq.s32.totalorder %v58_v35, %v70_v40  ;;  %v91_v52 = vpop.permute.xlu2 %90 }
  0x84   :  { %vm111_vm1 = vcmp.eq.s32.totalorder %v58_v35, %v64_v41  ;;  %vm120_vm15 = vcmp.eq.s32.totalorder %v58_v35, %v91_v52 }
  0x85   :  { %962 = vmatmul.msk.f32.gmra.mxu0 %vm111_vm1, %v1210_v39  ;;  %vm508_vm1 = vcmask 1043456  }
  0x8a   :  { %v97_v43 = vpop.permute.xlu1 %96 }
  0x8b   :  { %v79_v44 = vpop.permute.xlu0 %78  ;;  %vm122_vm3 = vcmp.eq.s32.totalorder %v58_v35, %v97_v43 }
  0x8c   :  { %973 = vmatmul.msk.f32.vlgmr.msra.gmra.mxu3 %vm122_vm3, %v1210_v39  ;;  %vm116_vm10 = vcmp.eq.s32.totalorder %v58_v35, %v79_v44  ;;  %vm426_vm3 = vcmask 1044480  }
  0x8d   :  { %963 = vmatmul.msk.f32.gmra.mxu0 %vm112_vm2, %v1210_v39  ;;  %vm542_vm2 = vcmask 261120  }
  0x92   :  { %v85_v47 = vpop.permute.xlu1 %84 }
  0x93   :  { %v100_v46 = vpop.permute.xlu0 %99  ;;  %vm118_vm13 = vcmp.eq.s32.totalorder %v58_v35, %v85_v47 }
  0x94   :  { %vm123_vm5 = vcmp.eq.s32.totalorder %v58_v35, %v100_v46 }
  0x95   :  { %964 = vmatmul.msk.f32.gmra.mxu0 %vm113_vm4, %v1210_v39  ;;  %974 = vmatmul.msk.f32.gmra.mxu3 %vm123_vm5, %v1210_v39  ;;  %vm344_vm4 = vcmask 1045504   ;;  %vm262_vm5 = vcmask 1046528  }
  0x9a   :  { %v106_v50 = vpop.permute.xlu1 %105 }
  0x9b   :  { %v88_v49 = vpop.permute.xlu0 %87  ;;  %vm125_vm9 = vcmp.eq.s32.totalorder %v58_v35, %v106_v50 }
  0x9c   :  { %vm119_vm14 = vcmp.eq.s32.totalorder %v58_v35, %v88_v49 }
  0x9d   :  { %965 = vmatmul.msk.f32.gmra.mxu0 %vm114_vm6, %v1210_v39  ;;  %975 = vmatmul.msk.f32.gmra.mxu3 %vm124_vm7, %v1210_v39  ;;  %vm559_vm6 = vcmask 523264   ;;  %vm576_vm7 = vcmask 785408  }
  0xa2   :  { %v94_v53 = vpop.permute.xlu1 %93 }
  0xa3   :  { %v109_v51 = vpop.permute.xlu0 %108  ;;  %vm121_vm0 = vcmp.eq.s32.totalorder %v58_v35, %v94_v53 }
  0xa4   :  { %vm126_vm11 = vcmp.eq.s32.totalorder %v58_v35, %v109_v51 }
  0xa5   :  { %966 = vmatmul.msk.f32.gmra.mxu0 %vm115_vm8, %v1210_v39  ;;  %976 = vmatmul.msk.f32.gmra.mxu3 %vm125_vm9, %v1210_v39  ;;  %vm891_vm8 = vcmask 1041409   ;;  %vm893_vm9 = vcmask 1042434  }
  0xad   :  { %967 = vmatmul.msk.f32.gmra.mxu0 %vm116_vm10, %v1210_v39  ;;  %977 = vmatmul.msk.f32.gmra.mxu3 %vm126_vm11, %v1210_v39  ;;  %vm895_vm10 = vcmask 1043459   ;;  %vm897_vm11 = vcmask 1044484  }
  0xb5   :  { %968 = vmatmul.msk.f32.gmra.mxu0 %vm117_vm12, %v1210_v39  ;;  %vm899_vm12 = vcmask 1045509  }
  0xbd   :  { %969 = vmatmul.msk.f32.gmra.mxu0 %vm118_vm13, %v1210_v39  ;;  %vm901_vm13 = vcmask 1046534  }
  0xc5   :  { %970 = vmatmul.msk.f32.gmra.mxu0 %vm119_vm14, %v1210_v39  ;;  %vm903_vm14 = vcmask 1047559  }
  0xcd   :  { %971 = vmatmul.msk.f32.gmra.mxu0 %vm120_vm15, %v1210_v39 }
  0xd5   :  { %972 = vmatmul.msk.f32.gmra.mxu0 %vm121_vm0, %v1210_v39 }
  0xfa   :  { %v1364_v58 = vpop.f32.mrf.mxu0 }
  0xfb   :  { %v509_v60 = vrot.slane %v1364_v58, 4  ;;  %v263_v2 = vrot.slane %v1364_v58, 1  ;;  %v345_v3 = vrot.slane %v1364_v58, 2  ;;  %v427_v4 = vrot.slane %v1364_v58, 3 }
 0x102   :  { %v1366_v59 = vpop.f32.mrf.mxu0 }
 0x103   :  { %v510_v61 = vrot.slane %v1366_v59, 4  ;;  %v264_v63 = vrot.slane %v1366_v59, 1  ;;  %v346_v0 = vrot.slane %v1366_v59, 2  ;;  %v428_v1 = vrot.slane %v1366_v59, 3 }
 0x105   :  { %v511_v62 = vsel %vm508_vm1, %v509_v60, %v510_v61  ;;  %v429_v10 = vsel %vm426_vm3, %v427_v4, %v428_v1  ;;  %v347_v11 = vsel %vm344_vm4, %v345_v3, %v346_v0  ;;  %v265_v12 = vsel %vm262_vm5, %v263_v2, %v264_v63 }
 0x106   :  { %978 = vmatmul.msk.f32.vlgmr.msra.gmra.mxu2 %vm542_vm2, %v511_v62 }
 0x10a   :  { %v1378_v5 = vpop.f32.mrf.mxu0 }
 0x10b   :  { %v266_v6 = vrot.slane %v1378_v5, 1  ;;  %v348_v7 = vrot.slane %v1378_v5, 2  ;;  %v430_v8 = vrot.slane %v1378_v5, 3  ;;  %v512_v9 = vrot.slane %v1378_v5, 4 }
 0x10d   :  { %v513_v13 = vsel %vm508_vm1, %v510_v61, %v512_v9  ;;  %v431_v14 = vsel %vm426_vm3, %v428_v1, %v430_v8  ;;  %v349_v15 = vsel %vm344_vm4, %v346_v0, %v348_v7  ;;  %v267_v16 = vsel %vm262_vm5, %v264_v63, %v266_v6 }
 0x10e   :  { %979 = vmatmul.msk.f32.gmra.mxu2 %vm542_vm2, %v513_v13  ;;  %v1048_v17 = vpack.i.bf16 %v431_v14, %v429_v10  ;;  %v1043_v18 = vpack.i.bf16 %v349_v15, %v347_v11  ;;  %v1038_v19 = vpack.i.bf16 %v267_v16, %v265_v12 }
 0x10f   :  { %v1441_v61 = vpop.f32.mrf.mxu3 }
 0x110   :  { %1049 = vrot.lane.b32.xlu1 %v1048_v17, %s1211_s25  ;;  %1044 = vrot.lane.b32.xlu0 %v1043_v18, %s1212_s26 }
 0x111   :  { %1039 = vrot.lane.b32.xlu2 %v1038_v19, %s1213_s27 }
 0x112   :  { %v1395_v20 = vpop.f32.mrf.mxu0 }
 0x113   :  { %v514_v21 = vrot.slane %v1395_v20, 4  ;;  %v268_v23 = vrot.slane %v1395_v20, 1  ;;  %v350_v24 = vrot.slane %v1395_v20, 2  ;;  %v432_v25 = vrot.slane %v1395_v20, 3 }
 0x115   :  { %v515_v22 = vsel %vm508_vm1, %v512_v9, %v514_v21  ;;  %v433_v31 = vsel %vm426_vm3, %v430_v8, %v432_v25  ;;  %v351_v32 = vsel %vm344_vm4, %v348_v7, %v350_v24  ;;  %v269_v33 = vsel %vm262_vm5, %v266_v6, %v268_v23 }
 0x116   :  { %980 = vmatmul.msk.f32.gmra.mxu2 %vm542_vm2, %v515_v22 }
 0x118   :  { %v1452_v4 = vpop.f32.mrf.mxu3 }
 0x11a   :  { %v1403_v26 = vpop.f32.mrf.mxu0 }
 0x11b   :  { %v270_v27 = vrot.slane %v1403_v26, 1  ;;  %v352_v28 = vrot.slane %v1403_v26, 2  ;;  %v434_v29 = vrot.slane %v1403_v26, 3  ;;  %v516_v30 = vrot.slane %v1403_v26, 4 }
 0x11d   :  { %v517_v34 = vsel %vm508_vm1, %v514_v21, %v516_v30  ;;  %v435_v35 = vsel %vm426_vm3, %v432_v25, %v434_v29  ;;  %v353_v36 = vsel %vm344_vm4, %v350_v24, %v352_v28  ;;  %v271_v37 = vsel %vm262_vm5, %v268_v23, %v270_v27 }
 0x11e   :  { %981 = vmatmul.msk.f32.gmra.mxu2 %vm542_vm2, %v517_v34  ;;  %v1063_v38 = vpack.i.bf16 %v435_v35, %v433_v31  ;;  %v1058_v39 = vpack.i.bf16 %v353_v36, %v351_v32  ;;  %v1053_v40 = vpack.i.bf16 %v271_v37, %v269_v33  ;;  %v288_v25 = vrot.slane %v1452_v4, 1 }
 0x11f   :  { %v450_v31 = vrot.slane %v1441_v61, 3 }
 0x120   :  { %1064 = vrot.lane.b32.xlu1 %v1063_v38, %s1211_s25  ;;  %1059 = vrot.lane.b32.xlu0 %v1058_v39, %s1212_s26  ;;  %v1480_v32 = vpop.f32.mrf.mxu3 }
 0x121   :  { %1054 = vrot.lane.b32.xlu2 %v1053_v40, %s1213_s27 }
 0x122   :  { %v1420_v41 = vpop.f32.mrf.mxu0 }
 0x123   :  { %v518_v42 = vrot.slane %v1420_v41, 4  ;;  %v272_v44 = vrot.slane %v1420_v41, 1  ;;  %v354_v45 = vrot.slane %v1420_v41, 2  ;;  %v436_v46 = vrot.slane %v1420_v41, 3 }
 0x125   :  { %v519_v43 = vsel %vm508_vm1, %v516_v30, %v518_v42  ;;  %v437_v52 = vsel %vm426_vm3, %v434_v29, %v436_v46  ;;  %v355_v53 = vsel %vm344_vm4, %v352_v28, %v354_v45  ;;  %v273_v54 = vsel %vm262_vm5, %v270_v27, %v272_v44 }
 0x126   :  { %982 = vmatmul.msk.f32.gmra.mxu2 %vm542_vm2, %v519_v43  ;;  %v370_v27 = vrot.slane %v1452_v4, 2  ;;  %v452_v28 = vrot.slane %v1452_v4, 3  ;;  %v286_v29 = vrot.slane %v1441_v61, 1  ;;  %v368_v30 = vrot.slane %v1441_v61, 2 }
 0x128   :  { %v453_v38 = vsel %vm426_vm3, %v450_v31, %v452_v28  ;;  %v371_v39 = vsel %vm344_vm4, %v368_v30, %v370_v27  ;;  %v289_v40 = vsel %vm262_vm5, %v286_v29, %v288_v25 }
 0x12a   :  { %v1428_v47 = vpop.f32.mrf.mxu0 }
 0x12b   :  { %v274_v48 = vrot.slane %v1428_v47, 1  ;;  %v356_v49 = vrot.slane %v1428_v47, 2  ;;  %v438_v50 = vrot.slane %v1428_v47, 3  ;;  %v520_v51 = vrot.slane %v1428_v47, 4 }
 0x12d   :  { %v521_v55 = vsel %vm508_vm1, %v518_v42, %v520_v51  ;;  %v439_v56 = vsel %vm426_vm3, %v436_v46, %v438_v50  ;;  %v357_v57 = vsel %vm344_vm4, %v354_v45, %v356_v49  ;;  %v275_v60 = vsel %vm262_vm5, %v272_v44, %v274_v48 }
 0x12e   :  { %983 = vmatmul.msk.f32.gmra.mxu2 %vm542_vm2, %v521_v55  ;;  %v1078_v62 = vpack.i.bf16 %v439_v56, %v437_v52  ;;  %v1073_v63 = vpack.i.bf16 %v357_v57, %v355_v53  ;;  %v1068_v0 = vpack.i.bf16 %v275_v60, %v273_v54  ;;  %v372_v52 = vrot.slane %v1480_v32, 2  ;;  %v607_v54 = vld [vmem:[%s1776_s2 + $0x70] sm:$0xff] }
 0x12f   :  { %v454_v53 = vrot.slane %v1480_v32, 3 }
 0x130   :  { %1079 = vrot.lane.b32.xlu1 %v1078_v62, %s1211_s25  ;;  %1074 = vrot.lane.b32.xlu0 %v1073_v63, %s1212_s26  ;;  %v1520_v63 = vpop.f32.mrf.mxu3 }
 0x131   :  { %1069 = vrot.lane.b32.xlu2 %v1068_v0, %s1213_s27  ;;  %v455_v0 = vsel %vm426_vm3, %v452_v28, %v454_v53 }
 0x132   :  { %v1447_v1 = vpop.f32.mrf.mxu0 }
 0x133   :  { %v522_v2 = vrot.slane %v1447_v1, 4  ;;  %v276_v6 = vrot.slane %v1447_v1, 1  ;;  %v358_v7 = vrot.slane %v1447_v1, 2  ;;  %v440_v8 = vrot.slane %v1447_v1, 3 }
 0x135   :  { %v523_v3 = vsel %vm508_vm1, %v520_v51, %v522_v2  ;;  %v441_v14 = vsel %vm426_vm3, %v438_v50, %v440_v8  ;;  %v359_v15 = vsel %vm344_vm4, %v356_v49, %v358_v7  ;;  %v277_v16 = vsel %vm262_vm5, %v274_v48, %v276_v6  ;;  %v608_v50 = vld [vmem:[%s1776_s2 + $0x78] sm:$0xff] }
 0x136   :  { %984 = vmatmul.msk.f32.gmra.mxu2 %vm542_vm2, %v523_v3  ;;  %661 = vmatpush.msra.mxu1 %v608_v50  ;;  %v290_v51 = vrot.slane %v1480_v32, 1 }
 0x137   :  { %1010 = vmatpush.msrb.mxu3 %v608_v50 }
 0x138   :  { %662 = vmatpush.msra.mxu1 %v607_v54  ;;  %v291_v3 = vsel %vm262_vm5, %v288_v25, %v290_v51 }
 0x139   :  { %1011 = vmatpush.msrb.mxu3 %v607_v54 }
 0x13a   :  { %v1457_v9 = vpop.f32.mrf.mxu0 }
 0x13b   :  { %v278_v10 = vrot.slane %v1457_v9, 1  ;;  %v360_v11 = vrot.slane %v1457_v9, 2  ;;  %v442_v12 = vrot.slane %v1457_v9, 3  ;;  %v524_v13 = vrot.slane %v1457_v9, 4 }
 0x13d   :  { %v525_v17 = vsel %vm508_vm1, %v522_v2, %v524_v13  ;;  %v443_v18 = vsel %vm426_vm3, %v440_v8, %v442_v12  ;;  %v361_v19 = vsel %vm344_vm4, %v358_v7, %v360_v11  ;;  %v279_v21 = vsel %vm262_vm5, %v276_v6, %v278_v10  ;;  %v606_v6 = vld [vmem:[%s1776_s2 + $0x68] sm:$0xff]  ;;  %v605_v7 = vld [vmem:[%s1776_s2 + $0x60] sm:$0xff] }
 0x13e   :  { %985 = vmatmul.msk.f32.gmra.mxu2 %vm542_vm2, %v525_v17  ;;  %v1093_v22 = vpack.i.bf16 %v443_v18, %v441_v14  ;;  %v1088_v23 = vpack.i.bf16 %v361_v19, %v359_v15  ;;  %v1083_v24 = vpack.i.bf16 %v279_v21, %v277_v16  ;;  %v373_v2 = vsel %vm344_vm4, %v370_v27, %v372_v52  ;;  %v604_v16 = vld [vmem:[%s1776_s2 + $0x58] sm:$0xff]  ;;  %v603_v21 = vld [vmem:[%s1776_s2 + $0x50] sm:$0xff] }
 0x13f   :  { %663 = vmatpush.msra.mxu1 %v606_v6  ;;  %1012 = vmatpush.msrb.mxu3 %v606_v6  ;;  %v292_v17 = vrot.slane %v1520_v63, 1  ;;  %v374_v18 = vrot.slane %v1520_v63, 2  ;;  %v456_v19 = vrot.slane %v1520_v63, 3 }
 0x140   :  { %1094 = vrot.lane.b32.xlu1 %v1093_v22, %s1211_s25  ;;  %1089 = vrot.lane.b32.xlu0 %v1088_v23, %s1212_s26  ;;  %v602_v23 = vld [vmem:[%s1776_s2 + $0x48] sm:$0xff] }
 0x141   :  { %1084 = vrot.lane.b32.xlu2 %v1083_v24, %s1213_s27  ;;  %664 = vmatpush.msra.mxu1 %v605_v7 }
 0x142   :  { %v1482_v33 = vpop.f32.mrf.mxu0  ;;  %1013 = vmatpush.msrb.mxu3 %v605_v7  ;;  %v595_v7 = vld [vmem:[%s1776_s2 + $0x10] sm:$0xff] }
 0x143   :  { %v280_v34 = vrot.slane %v1482_v33, 1  ;;  %v362_v35 = vrot.slane %v1482_v33, 2  ;;  %v444_v36 = vrot.slane %v1482_v33, 3  ;;  %v526_v37 = vrot.slane %v1482_v33, 4  ;;  %665 = vmatpush.msra.mxu1 %v604_v16 }
 0x144   :  { %1014 = vmatpush.msrb.mxu3 %v604_v16  ;;  %v538_v16 = vrot.slane %v1520_v63, 4 }
 0x145   :  { %v527_v42 = vsel %vm508_vm1, %v524_v13, %v526_v37  ;;  %v445_v43 = vsel %vm426_vm3, %v442_v12, %v444_v36  ;;  %v363_v44 = vsel %vm344_vm4, %v360_v11, %v362_v35  ;;  %v281_v45 = vsel %vm262_vm5, %v278_v10, %v280_v34  ;;  %666 = vmatpush.msra.mxu1 %v603_v21 }
 0x146   :  { %986 = vmatmul.msk.f32.gmra.mxu2 %vm542_vm2, %v527_v42  ;;  %v1108_v46 = vpack.i.bf16 %v445_v43, %v453_v38  ;;  %v1103_v48 = vpack.i.bf16 %v363_v44, %v371_v39  ;;  %v1098_v49 = vpack.i.bf16 %v281_v45, %v289_v40  ;;  %v1569_v43 = vpop.f32.mrf.mxu3  ;;  %1015 = vmatpush.msrb.mxu3 %v603_v21 }
 0x147   :  { %667 = vmatpush.msra.mxu1 %v602_v23  ;;  %v376_v50 = vrot.slane %v1569_v43, 2 }
 0x148   :  { %1109 = vrot.lane.b32.xlu1 %v1108_v46, %s1211_s25  ;;  %1104 = vrot.lane.b32.xlu0 %v1103_v48, %s1212_s26  ;;  %v600_v48 = vld [vmem:[%s1776_s2 + $0x38] sm:$0xff] }
 0x149   :  { %1099 = vrot.lane.b32.xlu2 %v1098_v49, %s1213_s27  ;;  %v599_v49 = vld [vmem:[%s1776_s2 + $0x30] sm:$0xff]  ;;  %1016 = vmatpush.msrb.mxu3 %v602_v23 }
 0x14a   :  { %v1514_v55 = vpop.f32.mrf.mxu0 }
 0x14b   :  { %v282_v56 = vrot.slane %v1514_v55, 1  ;;  %v364_v57 = vrot.slane %v1514_v55, 2  ;;  %v446_v60 = vrot.slane %v1514_v55, 3  ;;  %v528_v62 = vrot.slane %v1514_v55, 4 }
 0x14d   :  { %v529_v8 = vsel %vm508_vm1, %v526_v37, %v528_v62  ;;  %v447_v10 = vsel %vm426_vm3, %v444_v36, %v446_v60  ;;  %v365_v11 = vsel %vm344_vm4, %v362_v35, %v364_v57  ;;  %v283_v12 = vsel %vm262_vm5, %v280_v34, %v282_v56  ;;  %v601_v37 = vld [vmem:[%s1776_s2 + $0x40] sm:$0xff] }
 0x14e   :  { %987 = vmatmul.msk.f32.gmra.mxu2 %vm542_vm2, %v529_v8  ;;  %v1123_v13 = vpack.i.bf16 %v447_v10, %v455_v0  ;;  %v1118_v14 = vpack.i.bf16 %v365_v11, %v373_v2  ;;  %v1113_v15 = vpack.i.bf16 %v283_v12, %v291_v3  ;;  %v457_v34 = vsel %vm426_vm3, %v454_v53, %v456_v19  ;;  %v594_v10 = vld [vmem:[%s1776_s2 + $0x8] sm:$0xff]  ;;  %v593_v11 = vld [vmem:[%s1776_s2] sm:$0xff] }
 0x14f   :  { %v375_v35 = vsel %vm344_vm4, %v372_v52, %v374_v18  ;;  %v293_v36 = vsel %vm262_vm5, %v290_v51, %v292_v17  ;;  %668 = vmatpush.msra.mxu1 %v601_v37  ;;  %v294_v51 = vrot.slane %v1569_v43, 1  ;;  %v458_v52 = vrot.slane %v1569_v43, 3  ;;  %1017 = vmatpush.msrb.mxu3 %v601_v37 }
 0x150   :  { %1124 = vrot.lane.b32.xlu1 %v1123_v13, %s1211_s25  ;;  %1119 = vrot.lane.b32.xlu0 %v1118_v14, %s1212_s26  ;;  %v532_v53 = vrot.slane %v1441_v61, 4  ;;  %v377_v0 = vsel %vm344_vm4, %v374_v18, %v376_v50  ;;  %v534_v8 = vrot.slane %v1452_v4, 4  ;;  %v536_v14 = vrot.slane %v1480_v32, 4 }
 0x151   :  { %1114 = vrot.lane.b32.xlu2 %v1113_v15, %s1213_s27  ;;  %669 = vmatpush.msra.mxu1 %v600_v48  ;;  %v295_v2 = vsel %vm262_vm5, %v292_v17, %v294_v51  ;;  %v459_v3 = vsel %vm426_vm3, %v456_v19, %v458_v52 }
 0x152   :  { %v1548_v22 = vpop.f32.mrf.mxu0  ;;  %1018 = vmatpush.msrb.mxu3 %v600_v48  ;;  %v535_v12 = vsel %vm508_vm1, %v532_v53, %v534_v8  ;;  %v537_v15 = vsel %vm508_vm1, %v534_v8, %v536_v14  ;;  %v539_v17 = vsel %vm508_vm1, %v536_v14, %v538_v16 }
 0x153   :  { %v284_v24 = vrot.slane %v1548_v22, 1  ;;  %v366_v25 = vrot.slane %v1548_v22, 2  ;;  %v448_v27 = vrot.slane %v1548_v22, 3  ;;  %v530_v28 = vrot.slane %v1548_v22, 4  ;;  %670 = vmatpush.msra.mxu1 %v599_v49 }
 0x154   :  { %1019 = vmatpush.msrb.mxu3 %v599_v49 }
 0x155   :  { %v531_v38 = vsel %vm508_vm1, %v528_v62, %v530_v28  ;;  %v449_v39 = vsel %vm426_vm3, %v446_v60, %v448_v27  ;;  %v367_v40 = vsel %vm344_vm4, %v364_v57, %v366_v25  ;;  %v285_v42 = vsel %vm262_vm5, %v282_v56, %v284_v24  ;;  %v598_v57 = vld [vmem:[%s1776_s2 + $0x28] sm:$0xff]  ;;  %v597_v60 = vld [vmem:[%s1776_s2 + $0x20] sm:$0xff] }
 0x156   :  { %988 = vmatmul.msk.f32.gmra.mxu2 %vm542_vm2, %v531_v38  ;;  %v1138_v44 = vpack.i.bf16 %v449_v39, %v457_v34  ;;  %v1133_v45 = vpack.i.bf16 %v367_v40, %v375_v35  ;;  %v1128_v46 = vpack.i.bf16 %v285_v42, %v293_v36  ;;  %v369_v54 = vsel %vm344_vm4, %v366_v25, %v368_v30 }
 0x157   :  { %v287_v56 = vsel %vm262_vm5, %v284_v24, %v286_v29  ;;  %v533_v62 = vsel %vm508_vm1, %v530_v28, %v532_v53  ;;  %671 = vmatpush.msra.mxu1 %v598_v57  ;;  %v1148_v30 = vpack.i.bf16 %v369_v54, %v377_v0  ;;  %v596_v29 = vld [vmem:[%s1776_s2 + $0x18] sm:$0xff]  ;;  %1020 = vmatpush.msrb.mxu3 %v598_v57 }
 0x158   :  { %1139 = vrot.lane.b32.xlu1 %v1138_v44, %s1211_s25  ;;  %1134 = vrot.lane.b32.xlu0 %v1133_v45, %s1212_s26  ;;  %v1143_v6 = vpack.i.bf16 %v287_v56, %v295_v2  ;;  %v451_v13 = vsel %vm426_vm3, %v448_v27, %v450_v31  ;;  %v540_v31 = vrot.slane %v1569_v43, 4 }
 0x159   :  { %1129 = vrot.lane.b32.xlu2 %v1128_v46, %s1213_s27  ;;  %672 = vmatpush.msra.mxu1 %v597_v60 }
 0x15a   :  { %1021 = vmatpush.msrb.mxu3 %v597_v60  ;;  %v541_v19 = vsel %vm508_vm1, %v538_v16, %v540_v31 }
 0x15b   :  { %673 = vmatpush.msra.mxu1 %v596_v29 }
 0x15c   :  { %1022 = vmatpush.msrb.mxu3 %v596_v29 }
 0x15d   :  { %674 = vmatpush.msra.mxu1 %v595_v7 }
 0x15e   :  { %989 = vmatmul.msk.f32.gmra.mxu2 %vm542_vm2, %v533_v62  ;;  %1023 = vmatpush.msrb.mxu3 %v595_v7 }
 0x15f   :  { %675 = vmatpush.msra.mxu1 %v594_v10 }
 0x160   :  { %490 = vrot.lane.b32.xlu1 %v459_v3, %s1211_s25  ;;  %1149 = vrot.lane.b32.xlu0 %v1148_v30, %s1212_s26 }
 0x161   :  { %1144 = vrot.lane.b32.xlu2 %v1143_v6, %s1213_s27  ;;  %676 = vmatpush.msra.mxu1 %v593_v11 }
 0x162   :  { %1024 = vmatpush.msrb.mxu3 %v594_v10 }
 0x164   :  { %1025 = vmatpush.msrb.mxu3 %v593_v11 }
 0x166   :  { %990 = vmatmul.msk.f32.gmra.mxu2 %vm542_vm2, %v535_v12 }
 0x169   :  { %482 = vrot.lane.b32.xlu2 %v451_v13, %s1211_s25 }
 0x16b   :  { %v1040_v18 = vpop.permute.xlu2 %1039 }
 0x16c   :  { %v1041_v21 = vunpack.i.l.bf16 %v1040_v18  ;;  %v1042_v35 = vunpack.i.h.bf16 %v1040_v18 }
 0x16e   :  { %991 = vmatmul.msk.f32.gmra.mxu2 %vm542_vm2, %v537_v15  ;;  %v543_v28 = vsel %vm542_vm2, %v1364_v58, %v1041_v21  ;;  %v544_v39 = vsel %vm542_vm2, %v1366_v59, %v1042_v35 }
 0x176   :  { %992 = vmatmul.msk.f32.gmra.mxu2 %vm542_vm2, %v539_v17 }
 0x17b   :  { %v1055_v42 = vpop.permute.xlu2 %1054 }
 0x17c   :  { %v1056_v44 = vunpack.i.l.bf16 %v1055_v42  ;;  %v1057_v51 = vunpack.i.h.bf16 %v1055_v42 }
 0x17e   :  { %993 = vmatmul.msk.f32.gmra.mxu2 %vm542_vm2, %v541_v19  ;;  %v545_v49 = vsel %vm542_vm2, %v1378_v5, %v1056_v44  ;;  %v546_v54 = vsel %vm542_vm2, %v1395_v20, %v1057_v51 }
 0x182   :  { %v1050_v23 = vpop.permute.xlu1 %1049  ;;  %v1045_v24 = vpop.permute.xlu0 %1044 }
 0x183   :  { %v1051_v25 = vunpack.i.l.bf16 %v1050_v23  ;;  %v1046_v27 = vunpack.i.l.bf16 %v1045_v24  ;;  %v1047_v37 = vunpack.i.h.bf16 %v1045_v24  ;;  %v1052_v38 = vunpack.i.h.bf16 %v1050_v23 }
 0x185   :  { %v560_v34 = vsel %vm559_vm6, %v543_v28, %v1046_v27  ;;  %v561_v40 = vsel %vm559_vm6, %v544_v39, %v1047_v37 }
 0x186   :  { %v577_v36 = vsel %vm576_vm7, %v560_v34, %v1051_v25  ;;  %v578_v43 = vsel %vm576_vm7, %v561_v40, %v1052_v38 }
 0x187   :  { %677 = vmatmul.f32.vlgmr.msra.gmra.mxu1 %v577_v36 }
 0x18b   :  { %v1070_v57 = vpop.permute.xlu2 %1069 }
 0x18c   :  { %v1071_v62 = vunpack.i.l.bf16 %v1070_v57  ;;  %v1072_v7 = vunpack.i.h.bf16 %v1070_v57 }
 0x18e   :  { %v547_v29 = vsel %vm542_vm2, %v1403_v26, %v1071_v62  ;;  %v548_v11 = vsel %vm542_vm2, %v1420_v41, %v1072_v7 }
 0x18f   :  { %680 = vmatmul.f32.gmra.mxu1 %v578_v43 }
 0x192   :  { %v1065_v45 = vpop.permute.xlu1 %1064  ;;  %v1060_v58 = vpop.permute.xlu0 %1059 }
 0x193   :  { %v1066_v46 = vunpack.i.l.bf16 %v1065_v45  ;;  %v1061_v48 = vunpack.i.l.bf16 %v1060_v58  ;;  %v1062_v59 = vunpack.i.h.bf16 %v1060_v58  ;;  %v1067_v53 = vunpack.i.h.bf16 %v1065_v45 }
 0x195   :  { %v562_v50 = vsel %vm559_vm6, %v545_v49, %v1061_v48  ;;  %v563_v56 = vsel %vm559_vm6, %v546_v54, %v1062_v59 }
 0x196   :  { %v579_v52 = vsel %vm576_vm7, %v562_v50, %v1066_v46  ;;  %v580_v60 = vsel %vm576_vm7, %v563_v56, %v1067_v53  ;;  %v743_v53 = vpop.f32.mrf.mxu2 }
 0x197   :  { %683 = vmatmul.f32.gmra.mxu1 %v579_v52 }
 0x19b   :  { %v1085_v3 = vpop.permute.xlu2 %1084 }
 0x19c   :  { %v1086_v15 = vunpack.i.l.bf16 %v1085_v3  ;;  %v1087_v21 = vunpack.i.h.bf16 %v1085_v3 }
 0x19e   :  { %v549_v18 = vsel %vm542_vm2, %v1428_v47, %v1086_v15  ;;  %v550_v35 = vsel %vm542_vm2, %v1447_v1, %v1087_v21 }
 0x19f   :  { %686 = vmatmul.f32.gmra.mxu1 %v580_v60 }
 0x1a2   :  { %v1080_v0 = vpop.permute.xlu1 %1079  ;;  %v1075_v5 = vpop.permute.xlu0 %1074 }
 0x1a3   :  { %v1081_v30 = vunpack.i.l.bf16 %v1080_v0  ;;  %v1076_v2 = vunpack.i.l.bf16 %v1075_v5  ;;  %v1077_v8 = vunpack.i.h.bf16 %v1075_v5  ;;  %v1082_v10 = vunpack.i.h.bf16 %v1080_v0  ;;  %v1100_v14 = vpop.permute.xlu2 %1099 }
 0x1a4   :  { %v1101_v24 = vunpack.i.l.bf16 %v1100_v14  ;;  %v1102_v40 = vunpack.i.h.bf16 %v1100_v14 }
 0x1a5   :  { %v564_v6 = vsel %vm559_vm6, %v547_v29, %v1076_v2  ;;  %v565_v12 = vsel %vm559_vm6, %v548_v11, %v1077_v8 }
 0x1a6   :  { %v581_v20 = vsel %vm576_vm7, %v564_v6, %v1081_v30  ;;  %v582_v13 = vsel %vm576_vm7, %v565_v12, %v1082_v10  ;;  %v555_v47 = vsel %vm542_vm2, %v1441_v61, %v1101_v24  ;;  %v551_v48 = vsel %vm542_vm2, %v1457_v9, %v1102_v40  ;;  %v746_v12 = vpop.f32.mrf.mxu2 }
 0x1a7   :  { %689 = vmatmul.f32.gmra.mxu1 %v581_v20 }
 0x1ab   :  { %v1115_v25 = vpop.permute.xlu2 %1114 }
 0x1ac   :  { %v1116_v45 = vunpack.i.l.bf16 %v1115_v25  ;;  %v1117_v54 = vunpack.i.h.bf16 %v1115_v25 }
 0x1ae   :  { %v556_v52 = vsel %vm542_vm2, %v1452_v4, %v1116_v45  ;;  %v552_v30 = vsel %vm542_vm2, %v1482_v33, %v1117_v54 }
 0x1af   :  { %692 = vmatmul.f32.gmra.mxu1 %v582_v13 }
 0x1b2   :  { %v1095_v26 = vpop.permute.xlu1 %1094  ;;  %v1090_v16 = vpop.permute.xlu0 %1089 }
 0x1b3   :  { %v1096_v17 = vunpack.i.l.bf16 %v1095_v26  ;;  %v1091_v31 = vunpack.i.l.bf16 %v1090_v16  ;;  %v1092_v41 = vunpack.i.h.bf16 %v1090_v16  ;;  %v1097_v27 = vunpack.i.h.bf16 %v1095_v26  ;;  %v1130_v49 = vpop.permute.xlu2 %1129 }
 0x1b4   :  { %v1131_v9 = vunpack.i.l.bf16 %v1130_v49  ;;  %v1132_v20 = vunpack.i.h.bf16 %v1130_v49 }
 0x1b5   :  { %v566_v19 = vsel %vm559_vm6, %v549_v18, %v1091_v31  ;;  %v567_v38 = vsel %vm559_vm6, %v550_v35, %v1092_v41  ;;  %v749_v41 = vpop.f32.mrf.mxu2 }
 0x1b6   :  { %v583_v23 = vsel %vm576_vm7, %v566_v19, %v1096_v17  ;;  %v584_v42 = vsel %vm576_vm7, %v567_v38, %v1097_v27  ;;  %v557_v3 = vsel %vm542_vm2, %v1480_v32, %v1131_v9  ;;  %v553_v15 = vsel %vm542_vm2, %v1514_v55, %v1132_v20 }
 0x1b7   :  { %695 = vmatmul.f32.gmra.mxu1 %v583_v23 }
 0x1ba   :  { %v1110_v28 = vpop.permute.xlu1 %1109  ;;  %v1105_v34 = vpop.permute.xlu0 %1104 }
 0x1bb   :  { %v1111_v36 = vunpack.i.l.bf16 %v1110_v28  ;;  %v1106_v37 = vunpack.i.l.bf16 %v1105_v34  ;;  %v1107_v44 = vunpack.i.h.bf16 %v1105_v34  ;;  %v1112_v58 = vunpack.i.h.bf16 %v1110_v28  ;;  %v1145_v6 = vpop.permute.xlu2 %1144 }
 0x1bc   :  { %v1146_v33 = vunpack.i.l.bf16 %v1145_v6  ;;  %v1147_v18 = vunpack.i.h.bf16 %v1145_v6 }
 0x1bd   :  { %v572_v39 = vsel %vm559_vm6, %v555_v47, %v1106_v37  ;;  %v568_v51 = vsel %vm559_vm6, %v551_v48, %v1107_v44  ;;  %v752_v27 = vpop.f32.mrf.mxu2  ;;  %v613_v37 = vld [vmem:[%s1777_s3] sm:$0xff]  ;;  %v615_v48 = vld [vmem:[%s1777_s3 + $0x10] sm:$0xff] }
 0x1be   :  { %v589_v43 = vsel %vm576_vm7, %v572_v39, %v1111_v36  ;;  %v585_v56 = vsel %vm576_vm7, %v568_v51, %v1112_v58  ;;  %v558_v16 = vsel %vm542_vm2, %v1520_v63, %v1146_v33  ;;  %v554_v55 = vsel %vm542_vm2, %v1548_v22, %v1147_v18  ;;  %v614_v22 = vld [vmem:[%s1777_s3 + $0x8] sm:$0xff] }
 0x1bf   :  { %698 = vmatmul.f32.gmra.mxu1 %v584_v42  ;;  %713 = vmatmul.f32.vlgmr.msrb.gmra.mxu3 %v589_v43 }
 0x1c2   :  { %v1125_v1 = vpop.permute.xlu1 %1124  ;;  %v1120_v46 = vpop.permute.xlu0 %1119 }
 0x1c3   :  { %v1126_v50 = vunpack.i.l.bf16 %v1125_v1  ;;  %v1121_v61 = vunpack.i.l.bf16 %v1120_v46  ;;  %v1122_v60 = vunpack.i.h.bf16 %v1120_v46  ;;  %v1127_v62 = vunpack.i.h.bf16 %v1125_v1  ;;  %v483_v25 = vpop.permute.xlu2 %482 }
 0x1c5   :  { %v573_v59 = vsel %vm559_vm6, %v556_v52, %v1121_v61  ;;  %v569_v29 = vsel %vm559_vm6, %v552_v30, %v1122_v60  ;;  %v755_v28 = vpop.f32.mrf.mxu2 }
 0x1c6   :  { %v590_v57 = vsel %vm576_vm7, %v573_v59, %v1126_v50  ;;  %v586_v8 = vsel %vm576_vm7, %v569_v29, %v1127_v62  ;;  %v616_v50 = vld [vmem:[%s1777_s3 + $0x18] sm:$0xff] }
 0x1c7   :  { %701 = vmatmul.f32.gmra.mxu1 %v585_v56  ;;  %716 = vmatmul.f32.gmra.mxu3 %v590_v57 }
 0x1ca   :  { %v1140_v0 = vpop.permute.xlu1 %1139  ;;  %v1135_v5 = vpop.permute.xlu0 %1134 }
 0x1cb   :  { %v1141_v2 = vunpack.i.l.bf16 %v1140_v0  ;;  %v1136_v4 = vunpack.i.l.bf16 %v1135_v5  ;;  %v1137_v11 = vunpack.i.h.bf16 %v1135_v5  ;;  %v1142_v13 = vunpack.i.h.bf16 %v1140_v0 }
 0x1cd   :  { %v574_v7 = vsel %vm559_vm6, %v557_v3, %v1136_v4  ;;  %v570_v32 = vsel %vm559_vm6, %v553_v15, %v1137_v11  ;;  %v758_v34 = vpop.f32.mrf.mxu2  ;;  %v617_v4 = vld [vmem:[%s1777_s3 + $0x20] sm:$0xff] }
 0x1ce   :  { %v591_v10 = vsel %vm576_vm7, %v574_v7, %v1141_v2  ;;  %v587_v19 = vsel %vm576_vm7, %v570_v32, %v1142_v13  ;;  %v618_v7 = vld [vmem:[%s1777_s3 + $0x28] sm:$0xff] }
 0x1cf   :  { %704 = vmatmul.f32.gmra.mxu1 %v586_v8  ;;  %719 = vmatmul.f32.gmra.mxu3 %v591_v10 }
 0x1d2   :  { %v1150_v14 = vpop.permute.xlu0 %1149  ;;  %v491_v17 = vpop.permute.xlu1 %490 }
 0x1d3   :  { %v1151_v26 = vunpack.i.l.bf16 %v1150_v14  ;;  %v1152_v23 = vunpack.i.h.bf16 %v1150_v14 }
 0x1d5   :  { %v575_v31 = vsel %vm559_vm6, %v558_v16, %v1151_v26  ;;  %v571_v24 = vsel %vm559_vm6, %v554_v55, %v1152_v23  ;;  %v1699_v35 = vpop.f32.mrf.mxu2 }
 0x1d6   :  { %v592_v21 = vsel %vm576_vm7, %v575_v31, %v491_v17  ;;  %v588_v63 = vsel %vm576_vm7, %v571_v24, %v483_v25  ;;  %v620_v24 = vld [vmem:[%s1777_s3 + $0x38] sm:$0xff]  ;;  %v876_v25 = vld [vmem:[#allocation2 + $0x68] sm:$0xff] }
 0x1d7   :  { %707 = vmatmul.f32.gmra.mxu1 %v587_v19  ;;  %722 = vmatmul.f32.gmra.mxu3 %v592_v21  ;;  %v619_v19 = vld [vmem:[%s1777_s3 + $0x30] sm:$0xff]  ;;  %v878_v21 = vld [vmem:[#allocation2 + $0x78] sm:$0xff] }
 0x1d8   :  { %906 = vmatpush.msra.mxu3 %v878_v21 }
 0x1dd   :  { %v1707_v47 = vpop.f32.mrf.mxu2 }
 0x1df   :  { %710 = vmatmul.f32.gmra.mxu1 %v588_v63 }
 0x1e5   :  { %v1709_v46 = vpop.f32.mrf.mxu2 }
 0x1ed   :  { %v1717_v56 = vpop.f32.mrf.mxu2 }
 0x1f5   :  { %v1722_v3 = vpop.f32.mrf.mxu2 }
 0x1fd   :  { %v1729_v17 = vpop.f32.mrf.mxu2 }
 0x204   :  { %v678_v36 = vpop.f32.mrf.mxu1 }
 0x205   :  { %v679_v38 = vadd.f32 %v678_v36, %v613_v37  ;;  %v779_v37 = vpop.f32.mrf.mxu2 }
 0x207   :  { %v744_v40 = vadd.f32 %v743_v53, %v679_v38  ;;  %v874_v38 = vld [vmem:[#allocation2 + $0x58] sm:$0xff] }
 0x209   :  { %v791_v44 = vmax.f32 %v744_v40, 0.0  ;;  %v873_v40 = vld [vmem:[#allocation2 + $0x50] sm:$0xff] }
 0x20c   :  { %v681_v39 = vpop.f32.mrf.mxu1 }
 0x20d   :  { %v682_v42 = vadd.f32 %v681_v39, %v614_v22 }
 0x20f   :  { %v747_v43 = vadd.f32 %v746_v12, %v682_v42 }
 0x211   :  { %v792_v45 = vmax.f32 %v747_v43, 0.0 }
 0x213   :  { %v807_v58 = vmax.f32 %v791_v44, %v792_v45  ;;  %v872_v45 = vld [vmem:[#allocation2 + $0x48] sm:$0xff] }
 0x214   :  { %v684_v1 = vpop.f32.mrf.mxu1 }
 0x215   :  { %v685_v49 = vadd.f32 %v684_v1, %v615_v48  ;;  %v808_v61 = vrot.slane %v807_v58, 4 }
 0x217   :  { %v750_v52 = vadd.f32 %v749_v41, %v685_v49  ;;  %v809_v53 = vmax.f32 %v807_v58, %v808_v61  ;;  %v877_v41 = vld [vmem:[#allocation2 + $0x70] sm:$0xff]  ;;  %v871_v49 = vld [vmem:[#allocation2 + $0x40] sm:$0xff] }
 0x218   :  { %907 = vmatpush.msra.mxu3 %v877_v41 }
 0x219   :  { %v793_v57 = vmax.f32 %v750_v52, 0.0  ;;  %v810_v9 = vrot.slane %v809_v53, 2 }
 0x21a   :  { %908 = vmatpush.msra.mxu3 %v876_v25 }
 0x21b   :  { %v811_v30 = vmax.f32 %v809_v53, %v810_v9  ;;  %v622_v9 = vld [vmem:[%s1777_s3 + $0x48] sm:$0xff] }
 0x21c   :  { %v687_v51 = vpop.f32.mrf.mxu1 }
 0x21d   :  { %v688_v59 = vadd.f32 %v687_v51, %v616_v50  ;;  %v812_v20 = vrot.slane %v811_v30, 1  ;;  %v870_v50 = vld [vmem:[#allocation2 + $0x38] sm:$0xff]  ;;  %v782_v51 = vpop.f32.mrf.mxu2 }
 0x21f   :  { %v753_v54 = vadd.f32 %v752_v27, %v688_v59  ;;  %v813_v13 = vmax.f32 %v811_v30, %v812_v20  ;;  %v869_v59 = vld [vmem:[#allocation2 + $0x30] sm:$0xff] }
 0x221   :  { %v794_v60 = vmax.f32 %v753_v54, 0.0  ;;  %v626_v54 = vld [vmem:[%s1777_s3 + $0x68] sm:$0xff] }
 0x223   :  { %v814_v62 = vmax.f32 %v793_v57, %v794_v60 }
 0x224   :  { %v690_v0 = vpop.f32.mrf.mxu1 }
 0x225   :  { %v815_v5 = vrot.slane %v814_v62, 4  ;;  %v691_v6 = vadd.f32 %v690_v0, %v617_v4 }
 0x227   :  { %v816_v2 = vmax.f32 %v814_v62, %v815_v5  ;;  %v756_v33 = vadd.f32 %v755_v28, %v691_v6  ;;  %v875_v28 = vld [vmem:[#allocation2 + $0x60] sm:$0xff]  ;;  %v868_v62 = vld [vmem:[#allocation2 + $0x28] sm:$0xff] }
 0x228   :  { %909 = vmatpush.msra.mxu3 %v875_v28  ;;  %v625_v5 = vld [vmem:[%s1777_s3 + $0x60] sm:$0xff]  ;;  %v628_v28 = vld [vmem:[%s1777_s3 + $0x78] sm:$0xff] }
 0x229   :  { %v817_v29 = vrot.slane %v816_v2, 2  ;;  %v795_v16 = vmax.f32 %v756_v33, 0.0  ;;  %v865_v33 = vld [vmem:[#allocation2 + $0x10] sm:$0xff] }
 0x22a   :  { %910 = vmatpush.msra.mxu3 %v874_v38 }
 0x22b   :  { %v818_v8 = vmax.f32 %v816_v2, %v817_v29  ;;  %v867_v29 = vld [vmem:[#allocation2 + $0x20] sm:$0xff] }
 0x22c   :  { %v693_v10 = vpop.f32.mrf.mxu1  ;;  %911 = vmatpush.msra.mxu3 %v873_v40 }
 0x22d   :  { %v819_v11 = vrot.slane %v818_v8, 1  ;;  %v694_v12 = vadd.f32 %v693_v10, %v618_v7  ;;  %v866_v10 = vld [vmem:[#allocation2 + $0x18] sm:$0xff] }
 0x22e   :  { %912 = vmatpush.msra.mxu3 %v872_v45 }
 0x22f   :  { %v820_v14 = vmax.f32 %v818_v8, %v819_v11  ;;  %v759_v15 = vadd.f32 %v758_v34, %v694_v12 }
 0x230   :  { %913 = vmatpush.msra.mxu3 %v871_v49 }
 0x231   :  { %v1727_v26 = vsel %vm891_vm8, %v820_v14, %v813_v13  ;;  %v796_v32 = vmax.f32 %v759_v15, 0.0  ;;  %v864_v14 = vld [vmem:[#allocation2 + $0x8] sm:$0xff] }
 0x232   :  { %914 = vmatpush.msra.mxu3 %v870_v50 }
 0x233   :  { %v821_v31 = vmax.f32 %v795_v16, %v796_v32 }
 0x234   :  { %v696_v18 = vpop.f32.mrf.mxu1  ;;  %915 = vmatpush.msra.mxu3 %v869_v59 }
 0x235   :  { %v822_v23 = vrot.slane %v821_v31, 4  ;;  %v697_v55 = vadd.f32 %v696_v18, %v619_v19 }
 0x236   :  { %916 = vmatpush.msra.mxu3 %v868_v62 }
 0x237   :  { %v823_v63 = vmax.f32 %v821_v31, %v822_v23  ;;  %v762_v34 = vadd.f32 %v1699_v35, %v697_v55  ;;  %v785_v31 = vpop.f32.mrf.mxu2  ;;  %v863_v23 = vld [vmem:[#allocation2] sm:$0xff] }
 0x238   :  { %917 = vmatpush.msra.mxu3 %v867_v29 }
 0x239   :  { %v824_v39 = vrot.slane %v823_v63, 2  ;;  %v797_v42 = vmax.f32 %v762_v34, 0.0 }
 0x23a   :  { %918 = vmatpush.msra.mxu3 %v866_v10 }
 0x23b   :  { %v825_v1 = vmax.f32 %v823_v63, %v824_v39 }
 0x23c   :  { %v699_v27 = vpop.f32.mrf.mxu1  ;;  %919 = vmatpush.msra.mxu3 %v865_v33 }
 0x23d   :  { %v700_v36 = vadd.f32 %v699_v27, %v620_v24  ;;  %v826_v52 = vrot.slane %v825_v1, 1 }
 0x23e   :  { %920 = vmatpush.msra.mxu3 %v864_v14 }
 0x23f   :  { %v765_v22 = vadd.f32 %v1707_v47, %v700_v36  ;;  %v621_v47 = vld [vmem:[%s1777_s3 + $0x40] sm:$0xff]  ;;  %v827_v30 = vmax.f32 %v825_v1, %v826_v52  ;;  %v788_v39 = vpop.f32.mrf.mxu2 }
 0x240   :  { %921 = vmatpush.msra.mxu3 %v863_v23 }
 0x241   :  { %v798_v43 = vmax.f32 %v765_v22, 0.0  ;;  %v894_v15 = vsel %vm893_vm9, %v827_v30, %v1727_v26  ;;  %v623_v26 = vld [vmem:[%s1777_s3 + $0x50] sm:$0xff] }
 0x242   :  { %v714_v44 = vpop.f32.mrf.mxu3 }
 0x243   :  { %v828_v58 = vmax.f32 %v797_v42, %v798_v43  ;;  %v715_v20 = vadd.f32 %v714_v44, %v625_v5 }
 0x244   :  { %v702_v48 = vpop.f32.mrf.mxu1 }
 0x245   :  { %v829_v35 = vrot.slane %v828_v58, 4  ;;  %v703_v57 = vadd.f32 %v702_v48, %v621_v47  ;;  %v780_v18 = vadd.f32 %v779_v37, %v715_v20  ;;  %v624_v37 = vld [vmem:[%s1777_s3 + $0x58] sm:$0xff] }
 0x247   :  { %v830_v61 = vmax.f32 %v828_v58, %v829_v35  ;;  %v768_v8 = vadd.f32 %v1709_v46, %v703_v57  ;;  %v803_v24 = vmax.f32 %v780_v18, 0.0 }
 0x249   :  { %v831_v53 = vrot.slane %v830_v61, 2  ;;  %v799_v19 = vmax.f32 %v768_v8, 0.0 }
 0x24a   :  { %v717_v60 = vpop.f32.mrf.mxu3 }
 0x24b   :  { %v832_v0 = vmax.f32 %v830_v61, %v831_v53  ;;  %v718_v2 = vadd.f32 %v717_v60, %v626_v54 }
 0x24c   :  { %v705_v4 = vpop.f32.mrf.mxu1 }
 0x24d   :  { %v833_v6 = vrot.slane %v832_v0, 1  ;;  %v706_v7 = vadd.f32 %v705_v4, %v622_v9  ;;  %v783_v13 = vadd.f32 %v782_v51, %v718_v2 }
 0x24f   :  { %v834_v11 = vmax.f32 %v832_v0, %v833_v6  ;;  %v771_v12 = vadd.f32 %v1717_v56, %v706_v7  ;;  %v804_v46 = vmax.f32 %v783_v13, 0.0  ;;  %v627_v56 = vld [vmem:[%s1777_s3 + $0x70] sm:$0xff]  ;;  %v1153_v13 = vld [vmem:[%s1779_s5] ss:$0 sm:$0xff] }
 0x251   :  { %v800_v32 = vmax.f32 %v771_v12, 0.0  ;;  %v896_v16 = vsel %vm895_vm10, %v834_v11, %v894_v15  ;;  %v849_v63 = vmax.f32 %v803_v24, %v804_v46 }
 0x252   :  { %v720_v21 = vpop.f32.mrf.mxu3 }
 0x253   :  { %v835_v41 = vmax.f32 %v799_v19, %v800_v32  ;;  %v721_v25 = vadd.f32 %v720_v21, %v627_v56  ;;  %v850_v40 = vrot.slane %v849_v63, 4 }
 0x254   :  { %v708_v55 = vpop.f32.mrf.mxu1 }
 0x255   :  { %v836_v27 = vrot.slane %v835_v41, 4  ;;  %v709_v34 = vadd.f32 %v708_v55, %v623_v26  ;;  %v786_v38 = vadd.f32 %v785_v31, %v721_v25  ;;  %v851_v35 = vmax.f32 %v849_v63, %v850_v40 }
 0x257   :  { %v837_v42 = vmax.f32 %v835_v41, %v836_v27  ;;  %v774_v44 = vadd.f32 %v1722_v3, %v709_v34  ;;  %v805_v1 = vmax.f32 %v786_v38, 0.0  ;;  %v852_v53 = vrot.slane %v851_v35, 2 }
 0x259   :  { %v838_v50 = vrot.slane %v837_v42, 2  ;;  %v801_v61 = vmax.f32 %v774_v44, 0.0  ;;  %v853_v3 = vmax.f32 %v851_v35, %v852_v53 }
 0x25a   :  { %v723_v36 = vpop.f32.mrf.mxu3 }
 0x25b   :  { %v724_v22 = vadd.f32 %v723_v36, %v628_v28  ;;  %v839_v54 = vmax.f32 %v837_v42, %v838_v50  ;;  %v854_v4 = vrot.slane %v853_v3, 1 }
 0x25c   :  { %v711_v43 = vpop.f32.mrf.mxu1 }
 0x25d   :  { %v789_v45 = vadd.f32 %v788_v39, %v724_v22  ;;  %v712_v58 = vadd.f32 %v711_v43, %v624_v37  ;;  %v840_v0 = vrot.slane %v839_v54, 1  ;;  %v855_v20 = vmax.f32 %v853_v3, %v854_v4 }
 0x25f   :  { %v806_v48 = vmax.f32 %v789_v45, 0.0  ;;  %v777_v49 = vadd.f32 %v1729_v17, %v712_v58  ;;  %v841_v17 = vmax.f32 %v839_v54, %v840_v0 }
 0x261   :  { %v856_v47 = vmax.f32 %v805_v1, %v806_v48  ;;  %v802_v51 = vmax.f32 %v777_v49, 0.0  ;;  %v898_v8 = vsel %vm897_vm11, %v841_v17, %v896_v16 }
 0x263   :  { %v857_v52 = vrot.slane %v856_v47, 4  ;;  %v842_v59 = vmax.f32 %v801_v61, %v802_v51 }
 0x265   :  { %v858_v57 = vmax.f32 %v856_v47, %v857_v52  ;;  %v843_v60 = vrot.slane %v842_v59, 4 }
 0x267   :  { %v859_v9 = vrot.slane %v858_v57, 2  ;;  %v844_v62 = vmax.f32 %v842_v59, %v843_v60 }
 0x269   :  { %v860_v5 = vmax.f32 %v858_v57, %v859_v9  ;;  %v845_v30 = vrot.slane %v844_v62, 2 }
 0x26b   :  { %v846_v2 = vmax.f32 %v844_v62, %v845_v30  ;;  %v861_v6 = vrot.slane %v860_v5, 1 }
 0x26d   :  { %v847_v29 = vrot.slane %v846_v2, 1  ;;  %v862_v10 = vmax.f32 %v860_v5, %v861_v6 }
 0x26f   :  { %v848_v7 = vmax.f32 %v846_v2, %v847_v29 }
 0x271   :  { %v900_v11 = vsel %vm899_vm12, %v848_v7, %v898_v8 }
 0x272   :  { %v902_v12 = vsel %vm901_vm13, %v855_v20, %v900_v11 }
 0x273   :  { %v904_v33 = vsel %vm903_vm14, %v862_v10, %v902_v12 }
 0x274   :  { %922 = vmatmul.f32.vlgmr.msra.gmra.mxu3 %v904_v33 }
 0x2f7   :  { %v923_v14 = vpop.f32.mrf.mxu3 }
 0x2f8   :  { %v924_v15 = vadd.f32 %v1153_v13, %v923_v14 }
 0x2fa   :  { %926 = vst [vmem:[#allocation5] sm:$0xff] %v924_v15 }
 0x2fb   :  { %937 = dma.vmem_to_hbm [thread:$0]  %s933_s13, 128, %s935_s16, [#allocation4]  }
 0x2fc   :  { %1204 = dma.done.wait [#allocation4], 128  }
 0x2fd   :  { %1205 = vsyncadd [#allocation4], 4294967168 }
 0x2fe   :  { %942 = vsyncpa [#allocation3], 1 }
 0x2ff   :  { %943 = vsyncpa [#allocation4], 1 }

</bundles_post_ra>
